<compile_context>
chip_gen: v5e
topology: v5e:2x2
jax: 0.10.0
libtpu: 0.0.40
codegen_flags: <defaults>
</compile_context>

<pallas_src>
import jax
import jax.numpy as jnp
from jax.experimental import pallas as pl
from jax.experimental.pallas import tpu as pltpu


# ---------------------------------------------------------------------------
# Parameter construction (plain-JAX glue; deterministic, mirrors MMD.make_K)
# ---------------------------------------------------------------------------
def make_K(sigmas, n_qubit):
    D = 2 ** n_qubit
    idx = jnp.arange(D, dtype=jnp.int32)
    shifts = jnp.arange(n_qubit, dtype=jnp.int32)
    # to_binary: bit i of each integer, as float (D, n_qubit)
    bits = ((idx[:, None] >> shifts[None, :]) & 1).astype(jnp.float32)
    # norm_square[a, c] = || bits[a] - bits[c] ||^2   (== Hamming distance)
    diff = bits[:, None, :] - bits[None, :, :]
    norm_sq = jnp.sum(diff * diff, axis=-1)                        # (D, D)
    sig = jnp.asarray(sigmas, dtype=jnp.float32)                   # (S,)
    K = jnp.sum(jnp.exp(-norm_sq[:, :, None] / (2.0 * sig[None, None, :])),
                axis=-1)                                           # (D, D)
    return K.astype(jnp.float32)


# ---------------------------------------------------------------------------
# Pallas kernel: per grid step, xt/yt are (D, TB) batch tiles (batch on lanes),
# k is the full (D, D) kernel matrix, o is a lane-dense (1, TB) result row.
#   o[0, b] = d_b^T K d_b   with   d_b = x_b - y_b  (column b of the tile)
# ---------------------------------------------------------------------------
def _mmd_kernel(xt_ref, yt_ref, k_ref, o_ref):
    d = xt_ref[...] - yt_ref[...]                                    # (D, TB)
    kd = jnp.dot(k_ref[...], d, preferred_element_type=jnp.float32)  # (D, TB) MXU
    # Sublane reduce -> already lane-dense (1, TB): unmasked full-width stores.
    o_ref[...] = jnp.sum(kd * d, axis=0, keepdims=True)


def mmd_forward_batched(x, y, K, *, batch_tile=128):
    """Batched MMD: x, y are (B, D); returns (B,) with out[b] = d_b^T K d_b."""
    B, D = x.shape
    assert y.shape == (B, D) and K.shape == (D, D)

    # Pad the batch to a lane-aligned tile, then transpose so batch is the
    # lane (last) axis inside the kernel. Padding rows give d == 0 -> out 0.
    n_tiles = -(-B // batch_tile)
    Bp = n_tiles * batch_tile
    x32 = x.astype(jnp.float32)
    y32 = y.astype(jnp.float32)
    if Bp != B:
        pad = ((0, Bp - B), (0, 0))
        x32 = jnp.pad(x32, pad)
        y32 = jnp.pad(y32, pad)
    xt = x32.T                                                       # (D, Bp)
    yt = y32.T

    # TODO(synk): for n_qubit >= 11 (K >= 16 MiB) add a K-column grid axis with
    # pl.when-gated accumulation instead of loading K as a single (D, D) block.
    out = pl.pallas_call(
        _mmd_kernel,
        out_shape=jax.ShapeDtypeStruct((1, Bp), jnp.float32),
        grid=(n_tiles,),
        in_specs=[
            pl.BlockSpec((D, batch_tile), lambda i: (0, i)),
            pl.BlockSpec((D, batch_tile), lambda i: (0, i)),
            pl.BlockSpec((D, D), lambda i: (0, 0)),   # constant -> stays resident
        ],
        out_specs=pl.BlockSpec((1, batch_tile), lambda i: (0, i)),
        compiler_params=pltpu.CompilerParams(
            dimension_semantics=("parallel",)),       # v7x: shard batch over TCs
    )(xt, yt, K.astype(jnp.float32))
    return out[0, :B]                                                # (B,)


def mmd_forward(x, y, K):
    """Single-pair forward matching the PyTorch module: returns (1, 1)."""
    val = mmd_forward_batched(x.reshape(1, -1), y.reshape(1, -1), K)
    return val.reshape(1, 1)


# ---------------------------------------------------------------------------
if __name__ == "__main__":
    n_qubit = 7                        # D = 2^7 = 128  (lane-aligned)
    D = 2 ** n_qubit
    sigmas = [0.5, 1.0, 2.0, 4.0]
    B = 256                            # two batch tiles -> exercises the grid

    K = make_K(sigmas, n_qubit)

    key = jax.random.PRNGKey(0)
    kx, ky = jax.random.split(key)
    # Each row: a probability distribution over the 2^n bit-strings.
    x = jax.nn.softmax(jax.random.normal(kx, (B, D), dtype=jnp.float32), axis=-1)
    y = jax.nn.softmax(jax.random.normal(ky, (B, D), dtype=jnp.float32), axis=-1)

    out = mmd_forward_batched(x, y, K)
    jax.block_until_ready(out)

    # Plain-JAX reference: per-pair d^T K d (same contraction structure).
    dm = x - y
    ref = jnp.sum((dm @ K) * dm, axis=-1)
    assert out.shape == (B,)
    assert jnp.allclose(out, ref, rtol=1e-4, atol=1e-6), (out[:4], ref[:4])

    # Original single-pair module semantics ((1, 1) output).
    out1 = mmd_forward(x[0], y[0], K)
    jax.block_until_ready(out1)
    assert out1.shape == (1, 1)
    assert jnp.allclose(out1[0, 0], ref[0], rtol=1e-4, atol=1e-6), (out1, ref[0])

    print("KERNEL_OK")
</pallas_src>

<mosaic_0001>
module attributes {stable_mosaic.version = 11 : i64} {
  func.func @_mmd_kernel(%arg0: i32, %arg1: memref<128x128xf32, #tpu.memory_space<vmem>>, %arg2: memref<128x128xf32, #tpu.memory_space<vmem>>, %arg3: memref<128x128xf32, #tpu.memory_space<vmem>>, %arg4: memref<1x128xf32, #tpu.memory_space<vmem>>) attributes {dimension_semantics = [#tpu.dimension_semantics<parallel>], iteration_bounds = array<i64: 2>, scalar_prefetch = 0 : i64, scratch_operands = 0 : i64, tpu.core_type = #tpu.core_type<tc>, window_params = [{transform_indices = @transform_0, window_bounds = array<i64: 128, 128>}, {transform_indices = @transform_1, window_bounds = array<i64: 128, 128>}, {pipeline_mode = #tpu.pipeline_mode<synchronous>, transform_indices = @transform_2, window_bounds = array<i64: 128, 128>}, {transform_indices = @transform_3, window_bounds = array<i64: 1, 128>}]} {
    %c0 = arith.constant 0 : index
    %c0_0 = arith.constant 0 : index
    %0 = vector.load %arg1[%c0, %c0_0] : memref<128x128xf32, #tpu.memory_space<vmem>>, vector<128x128xf32>
    %c0_1 = arith.constant 0 : index
    %c0_2 = arith.constant 0 : index
    %1 = vector.load %arg2[%c0_1, %c0_2] : memref<128x128xf32, #tpu.memory_space<vmem>>, vector<128x128xf32>
    %2 = arith.subf %0, %1 : vector<128x128xf32>
    %c0_3 = arith.constant 0 : index
    %c0_4 = arith.constant 0 : index
    %3 = vector.load %arg3[%c0_3, %c0_4] : memref<128x128xf32, #tpu.memory_space<vmem>>, vector<128x128xf32>
    %cst = arith.constant dense<0.000000e+00> : vector<128x128xf32>
    %4 = tpu.matmul %3, %2, %cst {dimension_numbers = #tpu.dot_dimension_numbers<[1], [0], [0], [1], [0, 0, 1, 1], [], []>} : vector<128x128xf32>, vector<128x128xf32>, vector<128x128xf32> -> vector<128x128xf32>
    %5 = arith.mulf %4, %2 : vector<128x128xf32>
    %cst_5 = arith.constant dense<0.000000e+00> : vector<128xf32>
    %6 = vector.multi_reduction <add>, %5, %cst_5 [0] : vector<128x128xf32> to vector<128xf32>
    %7 = vector.shape_cast %6 : vector<128xf32> to vector<1x128xf32>
    %c0_6 = arith.constant 0 : index
    %c0_7 = arith.constant 0 : index
    %8 = vector.load %arg4[%c0_6, %c0_7] : memref<1x128xf32, #tpu.memory_space<vmem>>, vector<1x128xf32>
    tpu.vector_store %arg4[%c0_6, %c0_7], %7 {strides = array<i32>} : memref<1x128xf32, #tpu.memory_space<vmem>>, vector<1x128xf32>,
    return
  }
  func.func @transform_0(%arg0: i32) -> (i32, i32) {
    %c0_i32 = arith.constant 0 : i32
    %c0_i32_0 = arith.constant 0 : i32
    return %c0_i32, %arg0 : i32, i32
  }
  func.func @transform_1(%arg0: i32) -> (i32, i32) {
    %c0_i32 = arith.constant 0 : i32
    %c0_i32_0 = arith.constant 0 : i32
    return %c0_i32, %arg0 : i32, i32
  }
  func.func @transform_2(%arg0: i32) -> (i32, i32) {
    %c0_i32 = arith.constant 0 : i32
    %c0_i32_0 = arith.constant 0 : i32
    %c0_i32_1 = arith.constant 0 : i32
    return %c0_i32, %c0_i32_0 : i32, i32
  }
  func.func @transform_3(%arg0: i32) -> (i32, i32) {
    %c0_i32 = arith.constant 0 : i32
    %c0_i32_0 = arith.constant 0 : i32
    return %c0_i32, %arg0 : i32, i32
  }
}

</mosaic_0001>

<bundles_post_ra>
// kernel: tpu_custom_call.1
= control target key start
LH: loop header
LB: loop body
LE: loop exit
PB: predicated region body
PF: predicated region fallthrough
CT: control target
= control target key end

     0   :  { %s1150_s0 = inlined_call_operand.hbm [shape: f32[128,256], index: 0, kind: input, shape index: {}]   ;;  %s1151_s1 = inlined_call_operand.hbm [shape: f32[128,256], index: 1, kind: input, shape index: {}]   ;;  %s1152_s2 = inlined_call_operand.hbm [shape: f32[128,128], index: 2, kind: input, shape index: {}]   ;;  %s1153_s3 = inlined_call_operand.hbm [shape: f32[1,256], index: 3, kind: output, shape index: {}]  }
   0x1   :  { %1158 = sst [smem:[#allocation14_spill]] %s1150_s0 }
   0x2   :  { %1159 = sst [smem:[#allocation15_spill]] %s1152_s2 }
   0x3   :  { %8 = vsyncpa [#allocation3], 0 }
   0x4   :  { %10 = vsyncpa [#allocation3 + $0x1], 0 }
   0x5   :  { %11 = vsyncpa [#allocation6], 0 }
   0x6   :  { %13 = vsyncpa [#allocation6 + $0x1], 0 }
   0x7   :  { %14 = vsyncpa [#allocation4], 0 }
   0x8   :  { %16 = vsyncpa [#allocation4 + $0x1], 0  ;;  %s841_s12 = smov 0   ;;  %s843_s13 = smov 0  }
   0x9   :  { %s845_s14 = smov 0   ;;  %s847_s15 = smov 0  }
   0xa LB: > { %s862_s16 = sadd.s32 4294967295, %s815_s15   ;;  %s524_s17 = sadd.s32 4294967294, %s815_s15   ;;  %s815_s15 = sphi %s847_s15, %s1175_s15   ;;  %s811_s14 = sphi %s845_s14, %s1174_s14   ;;  %s807_s13 = sphi %s843_s13, %s1173_s13   ;;  %s803_s12 = sphi %s841_s12, %s1172_s12  }
   0xb   : > { %p42_p0 = scmp.ne.s32.totalorder %s807_s13, %s803_s12  ;;  %p43_p1 = scmp.eq.s32.totalorder %s862_s16, 0 }
   0xc   : > { %p113_p2 = scmp.eq.s32.totalorder %s862_s16, 1  ;;  %p119_p3 = scmp.eq.s32.totalorder %s524_s17, 1 }
   0xd   : > { %p871_p4 = por %p43_p1, %p42_p0  ;;  %p525_p5 = scmp.ge.s32.totalorder %s815_s15, 1 }
   0xe   : > { %p876_p6 = por %p119_p3, %p42_p0  ;;  %p126_p7 = scmp.lt.s32.totalorder %s815_s15, 3 }
   0xf   : > { %s1162_s2 = sld [smem:[#allocation15_spill]]  ;;  %s817_s24 = smov [#allocation7]  }
  0x10   : > { %p884_p8 = pnand %p525_p5, %p126_p7  ;;  %s139_s25 = sshll.u32 %s817_s24, 4  ;;  %s140_s25 = int_to_ptr.vmem [resolvable:$true] %s139_s25 }
  0x11   : > { %s894_s26 = sadd.s32 1, %s815_s15   ;;  %s1154_s27 = smov 128  }
  0x12   : > { %p596_p9 = pneg %p884_p8  ;;  %s1156_s28 = smov 8  }
  0x13   : > { %s26_s29 = ssub.s32 %s815_s15, %s894_s26  ;;  %s29_s30 = sadd.s32 1, %s811_s14 }
  0x14   : > { %p597_p10 = pnand %p596_p9, %p43_p1  ;;  %p27_p12 = scmp.eq.s32.totalorder %s26_s29, 0 }
  0x15   : > { %s137_s22 = sshll.u32 %s1162_s2, 4  ;;  %p36_p13 = scmp.ne.s32.totalorder %s811_s14, %s807_s13  ;;  %s138_s22 = int_to_ptr.hbm [resolvable:$true] %s137_s22 }
  0x16   : > { %599 = dma.hbm_to_vmem [thread:$0]  (!%p597_p10), %s138_s22, 2048, %s140_s25, [#allocation6], %s1154_s27, %s1154_s27, %s1156_s28  }
  0x17   : > { %p37_p0 = scmp.eq.s32.totalorder %s815_s15, 0  ;;  %p612_p3 = scmp.lt.s32.totalorder %s815_s15, 2 }
  0x18   : > { %s907_s4 = scalar_select %p27_p12, %s811_s14, %s29_s30  }
  0x19   : > { %p38_p5 = por %p37_p0, %p36_p13  ;;  %p911_p7 = por %p113_p2, %p36_p13 }
  0x1a   : > { %1164 = sst [smem:[#allocation13_spill]] %s907_s4  ;;  %s153_s6 = sand.u32 1, %s811_s14  }
  0x1b   : > { %s529_s7 = sshll.u32 %s815_s15, 3  ;;  %s917_s8 = sshll.u32 %s153_s6, 7 }
  0x1c   : > { %s1166_s0 = sld [smem:[#allocation14_spill]]  ;;  %s157_s20 = scalar_lea.vmem [#allocation2], %s917_s8 }
  0x1d   : > { %s164_s21 = sshll.u32 %s157_s20, 4  ;;  %p925_p9 = pnand %p612_p3, %p38_p5  ;;  %s165_s21 = int_to_ptr.vmem [resolvable:$true] %s164_s21 }
  0x1e   : > { %s182_s29 = scalar_lea.hbm %s1151_s1, %s529_s7  ;;  %s154_s9 = scalar_lea.sflag [#allocation3], %s153_s6 }
  0x1f   : > { %s183_s30 = sshll.u32 %s182_s29, 4  ;;  %p685_p10 = pneg %p925_p9  ;;  %s184_s30 = int_to_ptr.hbm [resolvable:$true] %s183_s30 }
  0x22   : > { %s161_s11 = scalar_lea.hbm %s1166_s0, %s529_s7  ;;  %s688_s28 = scalar_lea.hbm %s1166_s0, 256 }
  0x23   : > { %s162_s17 = sshll.u32 %s161_s11, 4  ;;  %s163_s17 = int_to_ptr.hbm [resolvable:$true] %s162_s17 }
  0x24   : > { %s681_s10 = sshra.s32 %s163_s17, 4  ;;  %s682_s10 = int_to_ptr.hbm [resolvable:$true] %s681_s10 }
  0x25   : > { %s683_s11 = scalar_lea.hbm %s682_s10, 128  ;;  %p689_p0 = scmp.lt.s32.totalorder %s682_s10, %s1166_s0 }
  0x26   : > { %p684_p2 = scmp.ne.s32.totalorder %s682_s10, %s683_s11  ;;  %p690_p3 = scmp.lt.s32.totalorder %s688_s28, %s683_s11 }
  0x28   : > { %p686_p12 = pnand %p685_p10, %p684_p2  ;;  %p691_p5 = por %p690_p3, %p689_p0 }
  0x2a   : > { %p687_p13 = pneg %p686_p12 }
  0x2c   : > { %p692_p11 = pnand %p691_p5, %p687_p13 }
  0x2e   : > { %695 = shalt.err (!%p692_p11)
}
  0x2f   : > { %s820_s6 = smov 256   ;;  %s1168_s7 = smov 8  }
  0x30   : > { %s1169_s29 = smov 128   ;;  %s178_s27 = scalar_lea.vmem [#allocation5], %s917_s8 }
  0x31   : > { %603 = dma.hbm_to_vmem [thread:$0]  (!%p925_p9), %s163_s17, 2048, %s165_s21, %s154_s9, %s820_s6, %s1169_s29, %s1168_s7  }
  0x32   : > { %s185_s20 = sshll.u32 %s178_s27, 4  ;;  %s174_s2 = sand.u32 1, %s815_s15   ;;  %s186_s20 = int_to_ptr.vmem [resolvable:$true] %s185_s20 }
  0x33   : > { %s175_s24 = scalar_lea.sflag [#allocation6], %s174_s2  ;;  %s711_s10 = sshra.s32 %s184_s30, 4  ;;  %s712_s10 = int_to_ptr.hbm [resolvable:$true] %s711_s10 }
  0x34   : > { %s713_s28 = scalar_lea.hbm %s712_s10, 128  ;;  %s718_s0 = scalar_lea.hbm %s1151_s1, 256 }
  0x35   : > { %p714_p2 = scmp.ne.s32.totalorder %s712_s10, %s713_s28  ;;  %p719_p13 = scmp.lt.s32.totalorder %s712_s10, %s1151_s1 }
  0x36   : > { %p720_p0 = scmp.lt.s32.totalorder %s718_s0, %s713_s28 }
  0x37   : > { %p716_p11 = pnand %p714_p2, %p685_p10 }
  0x38   : > { %p721_p3 = por %p720_p0, %p719_p13 }
  0x39   : > { %p717_p12 = pneg %p716_p11 }
  0x3b   : > { %p722_p5 = pnand %p721_p3, %p717_p12 }
  0x3d   : > { %725 = shalt.err (!%p722_p5)
}
  0x3e   : > { %606 = dma.hbm_to_vmem [thread:$0]  (!%p925_p9), %s184_s30, 2048, %s186_s20, %s175_s24, %s820_s6, %s1169_s29, %s1168_s7  }
  0x3f   : > { %197 = sbr.rel (%p884_p8) target bundleno = 302 (0x12e), region = 32  ;;  %s965_s2 = sand.u32 (!%p884_p8), 1, %s807_s13  }
  0x40   : > { %s533_s4 = sshll.u32 (!%p884_p8), %s965_s2, 7  ;;  %s200_s8 = scalar_lea.sflag (!%p884_p8), [#allocation3], %s965_s2 }
  0x41   : > { %s969_s0 = scalar_lea.vmem (!%p884_p8), [#allocation2], %s533_s4 }
  0x44   : > { %786 = dma.done.wait (%p871_p4), %s200_s8, 2048  }
  0x45   : > { %788 = vsyncadd (%p871_p4), %s200_s8, 4294965248  ;;  %s209_s21 = sand.u32 1, %s862_s16   ;;  %s976_s22 = scalar_lea.vmem [#allocation5], %s533_s4 }
  0x46   : > { %s210_s23 = scalar_lea.sflag [#allocation6], %s209_s21 }
  0x47   : > { %790 = dma.done.wait (%p871_p4), %s210_s23, 2048  }
  0x48   : > { %792 = vsyncadd (%p871_p4), %s210_s23, 4294965248 }
  0x49   : > { %794 = dma.done.wait (%p43_p1), [#allocation6], 2048  }
  0x4a   : > { %796 = vsyncadd (%p43_p1), [#allocation6], 4294965248  ;;  %v261_v0 = vld [vmem:[%s969_s0 + $0x78] sm:$0xff]  ;;  %v260_v2 = vld [vmem:[%s969_s0 + $0x70] sm:$0xff]  ;;  %s422_s9 = scalar_lea.hbm %s1153_s3, %s862_s16  ;;  %s245_s6 = scalar_lea.vmem [#allocation8], %s965_s2 }
  0x4b   : > { %v277_v1 = vld [vmem:[%s976_s22 + $0x78] sm:$0xff]  ;;  %v276_v4 = vld [vmem:[%s976_s22 + $0x70] sm:$0xff]  ;;  %v259_v5 = vld [vmem:[%s969_s0 + $0x68] sm:$0xff]  ;;  %s424_s7 = sshll.u32 %s245_s6, 4  ;;  %s426_s29 = sshll.u32 %s422_s9, 4  ;;  %s425_s7 = int_to_ptr.vmem [resolvable:$true] %s424_s7  ;;  %s427_s29 = int_to_ptr.hbm [resolvable:$true] %s426_s29 }
  0x4c   : > { %v989_v3 = vsub.f32 %v261_v0, %v277_v1  ;;  %v275_v6 = vld [vmem:[%s976_s22 + $0x68] sm:$0xff]  ;;  %v994_v7 = vsub.f32 %v260_v2, %v276_v4  ;;  %v258_v8 = vld [vmem:[%s969_s0 + $0x60] sm:$0xff]  ;;  %v257_v11 = vld [vmem:[%s969_s0 + $0x58] sm:$0xff]  ;;  %s414_s27 = scalar_lea.sflag [#allocation4], %s965_s2  ;;  %s755_s20 = sshra.s32 %s427_s29, 4  ;;  %s756_s20 = int_to_ptr.hbm [resolvable:$true] %s755_s20 }
  0x4d   : > { %v274_v9 = vld [vmem:[%s976_s22 + $0x60] sm:$0xff]  ;;  %v999_v10 = vsub.f32 %v259_v5, %v275_v6  ;;  %v273_v12 = vld [vmem:[%s976_s22 + $0x58] sm:$0xff]  ;;  %v256_v14 = vld [vmem:[%s969_s0 + $0x50] sm:$0xff]  ;;  %s757_s24 = scalar_lea.hbm %s756_s20, 1  ;;  %s761_s16 = scalar_lea.hbm %s1153_s3, 2 }
  0x4e   : > { %310 = vmatpush.msra.mxu0 %v989_v3  ;;  %538 = vmatpush.msra.mxu1 %v989_v3  ;;  %v1007_v13 = vsub.f32 %v258_v8, %v274_v9  ;;  %v272_v15 = vld [vmem:[%s976_s22 + $0x50] sm:$0xff]  ;;  %v1015_v16 = vsub.f32 %v257_v11, %v273_v12  ;;  %v255_v17 = vld [vmem:[%s969_s0 + $0x48] sm:$0xff]  ;;  %v254_v20 = vld [vmem:[%s969_s0 + $0x40] sm:$0xff]  ;;  %p758_p1 = scmp.ne.s32.totalorder %s756_s20, %s757_s24  ;;  %p762_p9 = scmp.lt.s32.totalorder %s756_s20, %s1153_s3 }
  0x4f   : > { %539 = vmatpush.msra.mxu2 %v989_v3  ;;  %540 = vmatpush.msra.mxu3 %v989_v3  ;;  %v271_v18 = vld [vmem:[%s976_s22 + $0x48] sm:$0xff]  ;;  %v1023_v19 = vsub.f32 %v256_v14, %v272_v15  ;;  %v270_v21 = vld [vmem:[%s976_s22 + $0x40] sm:$0xff]  ;;  %v253_v23 = vld [vmem:[%s969_s0 + $0x38] sm:$0xff]  ;;  %p763_p10 = scmp.lt.s32.totalorder %s761_s16, %s757_s24 }
  0x50   : > { %311 = vmatpush.msra.mxu0 %v994_v7  ;;  %541 = vmatpush.msra.mxu1 %v994_v7  ;;  %v1031_v22 = vsub.f32 %v255_v17, %v271_v18  ;;  %v269_v24 = vld [vmem:[%s976_s22 + $0x38] sm:$0xff]  ;;  %v1039_v25 = vsub.f32 %v254_v20, %v270_v21  ;;  %v252_v26 = vld [vmem:[%s969_s0 + $0x30] sm:$0xff]  ;;  %v251_v29 = vld [vmem:[%s969_s0 + $0x28] sm:$0xff]  ;;  %p759_p4 = pnand %p758_p1, %p911_p7 }
  0x51   : > { %542 = vmatpush.msra.mxu2 %v994_v7  ;;  %543 = vmatpush.msra.mxu3 %v994_v7  ;;  %v268_v27 = vld [vmem:[%s976_s22 + $0x30] sm:$0xff]  ;;  %v1047_v28 = vsub.f32 %v253_v23, %v269_v24  ;;  %v267_v30 = vld [vmem:[%s976_s22 + $0x28] sm:$0xff]  ;;  %v250_v32 = vld [vmem:[%s969_s0 + $0x20] sm:$0xff]  ;;  %p764_p2 = por %p763_p10, %p762_p9 }
  0x52   : > { %312 = vmatpush.msra.mxu0 %v999_v10  ;;  %544 = vmatpush.msra.mxu1 %v999_v10  ;;  %v1055_v31 = vsub.f32 %v252_v26, %v268_v27  ;;  %v266_v33 = vld [vmem:[%s976_s22 + $0x20] sm:$0xff]  ;;  %v1063_v34 = vsub.f32 %v251_v29, %v267_v30  ;;  %v249_v35 = vld [vmem:[%s969_s0 + $0x18] sm:$0xff]  ;;  %v248_v38 = vld [vmem:[%s969_s0 + $0x10] sm:$0xff]  ;;  %p760_p8 = pneg %p759_p4 }
  0x53   : > { %545 = vmatpush.msra.mxu2 %v999_v10  ;;  %546 = vmatpush.msra.mxu3 %v999_v10  ;;  %v265_v36 = vld [vmem:[%s976_s22 + $0x18] sm:$0xff]  ;;  %v1071_v37 = vsub.f32 %v250_v32, %v266_v33  ;;  %v264_v39 = vld [vmem:[%s976_s22 + $0x10] sm:$0xff]  ;;  %v247_v41 = vld [vmem:[%s969_s0 + $0x8] sm:$0xff] }
  0x54   : > { %313 = vmatpush.msra.mxu0 %v1007_v13  ;;  %547 = vmatpush.msra.mxu1 %v1007_v13  ;;  %v1079_v40 = vsub.f32 %v249_v35, %v265_v36  ;;  %v263_v42 = vld [vmem:[%s976_s22 + $0x8] sm:$0xff]  ;;  %v1087_v43 = vsub.f32 %v248_v38, %v264_v39  ;;  %v246_v44 = vld [vmem:[%s969_s0] sm:$0xff]  ;;  %v296_v56 = vld [vmem:[#allocation7 + $0x10] sm:$0xff]  ;;  %p765_p11 = pnand %p764_p2, %p760_p8 }
  0x55   : > { %548 = vmatpush.msra.mxu2 %v1007_v13  ;;  %549 = vmatpush.msra.mxu3 %v1007_v13  ;;  %v262_v45 = vld [vmem:[%s976_s22] sm:$0xff]  ;;  %v279_v46 = vsub.f32 %v247_v41, %v263_v42  ;;  %v295_v52 = vld [vmem:[#allocation7 + $0x8] sm:$0xff]  ;;  %v300_v57 = vld [vmem:[#allocation7 + $0x30] sm:$0xff] }
  0x56   : > { %314 = vmatpush.msra.mxu0 %v1015_v16  ;;  %550 = vmatpush.msra.mxu1 %v1015_v16  ;;  %v278_v47 = vsub.f32 %v246_v44, %v262_v45  ;;  %v294_v48 = vld [vmem:[#allocation7] sm:$0xff]  ;;  %v299_v53 = vld [vmem:[#allocation7 + $0x28] sm:$0xff]  ;;  %v304_v58 = vld [vmem:[#allocation7 + $0x50] sm:$0xff] }
  0x57   : > { %551 = vmatpush.msra.mxu2 %v1015_v16  ;;  %552 = vmatpush.msra.mxu3 %v1015_v16  ;;  %v298_v49 = vld [vmem:[#allocation7 + $0x20] sm:$0xff]  ;;  %v303_v54 = vld [vmem:[#allocation7 + $0x48] sm:$0xff]  ;;  %v308_v59 = vld [vmem:[#allocation7 + $0x70] sm:$0xff] }
  0x58   : > { %315 = vmatpush.msra.mxu0 %v1023_v19  ;;  %553 = vmatpush.msra.mxu1 %v1023_v19  ;;  %v302_v50 = vld [vmem:[#allocation7 + $0x40] sm:$0xff]  ;;  %v307_v55 = vld [vmem:[#allocation7 + $0x68] sm:$0xff]  ;;  %v297_v60 = vld [vmem:[#allocation7 + $0x18] sm:$0xff] }
  0x59   : > { %554 = vmatpush.msra.mxu2 %v1023_v19  ;;  %555 = vmatpush.msra.mxu3 %v1023_v19  ;;  %v306_v51 = vld [vmem:[#allocation7 + $0x60] sm:$0xff]  ;;  %v301_v61 = vld [vmem:[#allocation7 + $0x38] sm:$0xff] }
  0x5a   : > { %316 = vmatpush.msra.mxu0 %v1031_v22  ;;  %556 = vmatpush.msra.mxu1 %v1031_v22  ;;  %v305_v62 = vld [vmem:[#allocation7 + $0x58] sm:$0xff] }
  0x5b   : > { %557 = vmatpush.msra.mxu2 %v1031_v22  ;;  %558 = vmatpush.msra.mxu3 %v1031_v22  ;;  %v309_v63 = vld [vmem:[#allocation7 + $0x78] sm:$0xff] }
  0x5c   : > { %317 = vmatpush.msra.mxu0 %v1039_v25  ;;  %559 = vmatpush.msra.mxu1 %v1039_v25 }
  0x5d   : > { %560 = vmatpush.msra.mxu2 %v1039_v25  ;;  %561 = vmatpush.msra.mxu3 %v1039_v25 }
  0x5e   : > { %318 = vmatpush.msra.mxu0 %v1047_v28  ;;  %562 = vmatpush.msra.mxu1 %v1047_v28 }
  0x5f   : > { %563 = vmatpush.msra.mxu2 %v1047_v28  ;;  %564 = vmatpush.msra.mxu3 %v1047_v28 }
  0x60   : > { %319 = vmatpush.msra.mxu0 %v1055_v31  ;;  %565 = vmatpush.msra.mxu1 %v1055_v31 }
  0x61   : > { %566 = vmatpush.msra.mxu2 %v1055_v31  ;;  %567 = vmatpush.msra.mxu3 %v1055_v31 }
  0x62   : > { %320 = vmatpush.msra.mxu0 %v1063_v34  ;;  %568 = vmatpush.msra.mxu1 %v1063_v34 }
  0x63   : > { %569 = vmatpush.msra.mxu2 %v1063_v34  ;;  %570 = vmatpush.msra.mxu3 %v1063_v34 }
  0x64   : > { %321 = vmatpush.msra.mxu0 %v1071_v37  ;;  %571 = vmatpush.msra.mxu1 %v1071_v37 }
  0x65   : > { %572 = vmatpush.msra.mxu2 %v1071_v37  ;;  %573 = vmatpush.msra.mxu3 %v1071_v37 }
  0x66   : > { %322 = vmatpush.msra.mxu0 %v1079_v40  ;;  %574 = vmatpush.msra.mxu1 %v1079_v40 }
  0x67   : > { %575 = vmatpush.msra.mxu2 %v1079_v40  ;;  %576 = vmatpush.msra.mxu3 %v1079_v40 }
  0x68   : > { %323 = vmatpush.msra.mxu0 %v1087_v43  ;;  %577 = vmatpush.msra.mxu1 %v1087_v43 }
  0x69   : > { %578 = vmatpush.msra.mxu2 %v1087_v43  ;;  %579 = vmatpush.msra.mxu3 %v1087_v43 }
  0x6a   : > { %324 = vmatpush.msra.mxu0 %v279_v46  ;;  %580 = vmatpush.msra.mxu1 %v279_v46 }
  0x6b   : > { %581 = vmatpush.msra.mxu2 %v279_v46  ;;  %582 = vmatpush.msra.mxu3 %v279_v46 }
  0x6c   : > { %325 = vmatpush.msra.mxu0 %v278_v47  ;;  %583 = vmatpush.msra.mxu1 %v278_v47 }
  0x6d   : > { %326 = vmatmul.f32.vlgmr.msra.gmra.mxu0 %v294_v48  ;;  %338 = vmatmul.f32.vlgmr.msra.gmra.mxu1 %v298_v49 }
  0x6e   : > { %584 = vmatpush.msra.mxu2 %v278_v47  ;;  %585 = vmatpush.msra.mxu3 %v278_v47 }
  0x6f   : > { %350 = vmatmul.f32.vlgmr.msra.gmra.mxu2 %v302_v50  ;;  %362 = vmatmul.f32.vlgmr.msra.gmra.mxu3 %v306_v51 }
  0x75   : > { %329 = vmatmul.f32.gmra.mxu0 %v295_v52  ;;  %341 = vmatmul.f32.gmra.mxu1 %v299_v53 }
  0x77   : > { %353 = vmatmul.f32.gmra.mxu2 %v303_v54  ;;  %365 = vmatmul.f32.gmra.mxu3 %v307_v55 }
  0x7d   : > { %332 = vmatmul.f32.gmra.mxu0 %v296_v56  ;;  %344 = vmatmul.f32.gmra.mxu1 %v300_v57 }
  0x7f   : > { %356 = vmatmul.f32.gmra.mxu2 %v304_v58  ;;  %368 = vmatmul.f32.gmra.mxu3 %v308_v59 }
  0x85   : > { %335 = vmatmul.f32.gmra.mxu0 %v297_v60  ;;  %347 = vmatmul.f32.gmra.mxu1 %v301_v61 }
  0x87   : > { %359 = vmatmul.f32.gmra.mxu2 %v305_v62  ;;  %371 = vmatmul.f32.gmra.mxu3 %v309_v63 }
  0xea   : > { %v327_v0 = vpop.f32.mrf.mxu0  ;;  %v339_v1 = vpop.f32.mrf.mxu1 }
  0xeb   : > { %v375_v14 = vmul.f32 %v327_v0, %v278_v47  ;;  %v379_v26 = vmul.f32 %v339_v1, %v1071_v37 }
  0xf2   : > { %v330_v2 = vpop.f32.mrf.mxu0  ;;  %v342_v4 = vpop.f32.mrf.mxu1 }
  0xf3   : > { %v351_v5 = vpop.f32.mrf.mxu2  ;;  %v363_v6 = vpop.f32.mrf.mxu3  ;;  %v376_v12 = vmul.f32 %v330_v2, %v279_v46  ;;  %v380_v30 = vmul.f32 %v342_v4, %v1063_v34 }
  0xf4   : > { %v383_v41 = vmul.f32 %v351_v5, %v1039_v25 }
  0xf5   : > { %v391_v17 = vadd.f32 %v376_v12, %v375_v14 }
  0xfa   : > { %v333_v8 = vpop.f32.mrf.mxu0  ;;  %v345_v11 = vpop.f32.mrf.mxu1 }
  0xfb   : > { %v354_v9 = vpop.f32.mrf.mxu2  ;;  %v377_v15 = vmul.f32 %v333_v8, %v1087_v43  ;;  %v366_v20 = vpop.f32.mrf.mxu3  ;;  %v381_v33 = vmul.f32 %v345_v11, %v1055_v31  ;;  %v387_v31 = vmul.f32 %v363_v6, %v1007_v13 }
  0xfc   : > { %v388_v48 = vmul.f32 %v366_v20, %v999_v10 }
  0xfd   : > { %v392_v21 = vadd.f32 %v391_v17, %v377_v15 }
 0x102   : > { %v336_v18 = vpop.f32.mrf.mxu0  ;;  %v348_v29 = vpop.f32.mrf.mxu1 }
 0x103   : > { %v378_v23 = vmul.f32 %v336_v18, %v1079_v40  ;;  %v357_v24 = vpop.f32.mrf.mxu2  ;;  %v382_v36 = vmul.f32 %v348_v29, %v1047_v28  ;;  %v369_v39 = vpop.f32.mrf.mxu3  ;;  %v384_v40 = vmul.f32 %v354_v9, %v1031_v22 }
 0x104   : > { %v385_v37 = vmul.f32 %v357_v24, %v1023_v19  ;;  %v389_v49 = vmul.f32 %v369_v39, %v994_v7 }
 0x105   : > { %v393_v27 = vadd.f32 %v392_v21, %v378_v23 }
 0x107   : > { %v394_v32 = vadd.f32 %v393_v27, %v379_v26 }
 0x109   : > { %v395_v35 = vadd.f32 %v394_v32, %v380_v30 }
 0x10b   : > { %v396_v38 = vadd.f32 %v395_v35, %v381_v33  ;;  %v360_v43 = vpop.f32.mrf.mxu2  ;;  %v372_v47 = vpop.f32.mrf.mxu3 }
 0x10c   : > { %v386_v34 = vmul.f32 %v360_v43, %v1015_v16  ;;  %v390_v22 = vmul.f32 %v372_v47, %v989_v3 }
 0x10d   : > { %v397_v42 = vadd.f32 %v396_v38, %v382_v36 }
 0x10f   : > { %v398_v44 = vadd.f32 %v397_v42, %v383_v41 }
 0x111   : > { %v399_v45 = vadd.f32 %v398_v44, %v384_v40 }
 0x113   : > { %v400_v46 = vadd.f32 %v399_v45, %v385_v37 }
 0x115   : > { %v401_v28 = vadd.f32 %v400_v46, %v386_v34 }
 0x117   : > { %v402_v25 = vadd.f32 %v401_v28, %v387_v31 }
 0x119   : > { %v403_v50 = vadd.f32 %v402_v25, %v388_v48 }
 0x11b   : > { %v404_v19 = vadd.f32 %v403_v50, %v389_v49 }
 0x11d   : > { %v405_v51 = vadd.f32 %v404_v19, %v390_v22 }
 0x11f   : > { %v406_v52 = vrot.slane %v405_v51, 4 }
 0x121   : > { %v407_v53 = vadd.f32 %v406_v52, %v405_v51 }
 0x123   : > { %v408_v16 = vrot.slane %v407_v53, 2 }
 0x125   : > { %v409_v13 = vadd.f32 %v408_v16, %v407_v53 }
 0x127   : > { %v410_v10 = vrot.slane %v409_v13, 1 }
 0x129   : > { %v411_v7 = vadd.f32 %v410_v10, %v409_v13 }
 0x12b   : > { %412 = vst [vmem:[%s245_s6] sm:$0x1] %v411_v7 }
 0x12c   : > { %768 = shalt.err (!%p765_p11)
}
 0x12d   : > { %594 = dma.vmem_to_hbm [thread:$0]  (%p911_p7), %s425_s7, 16, %s427_s29, %s414_s27  }
 0x12e PF: > { %s438_s17 = sand.u32 1, %s803_s12   ;;  %p1170_p12 = scmp.ge.s32.totalorder %s815_s15, 2 }
 0x12f   : > { %s439_s2 = scalar_lea.sflag [#allocation4], %s438_s17 }
 0x130   : > { %p608_p13 = pnand %p1170_p12, %p876_p6 }
 0x132   : > { %p609_p0 = pneg %p608_p13 }
 0x134   : > { %798 = dma.done.wait (%p609_p0), %s439_s2, 16  }
 0x135   : > { %800 = vsyncadd (%p609_p0), %s439_s2, 4294967280  ;;  %s1171_s4 = sld [smem:[#allocation13_spill]]  ;;  %p19_p3 = scmp.ge.s32.totalorder %s894_s26, 4  }
 0x136   : > { %s1172_s12 = smov %s807_s13  ;;  %s1173_s13 = smov %s811_s14 }
 0x137   : > { %s1175_s15 = smov %s894_s26  ;;  %21 = sbr.rel (!%p19_p3) target bundleno = 10 (0xa), region = 94 }
 0x13b   : > { %s1174_s14 = smov %s1171_s4 }
 0x13c   :  { %444 = vsyncpa [#allocation3], 1 }
 0x13d   :  { %446 = vsyncpa [#allocation3 + $0x1], 1 }
 0x13e   :  { %447 = vsyncpa [#allocation6], 1 }
 0x13f   :  { %449 = vsyncpa [#allocation6 + $0x1], 1 }
 0x140   :  { %450 = vsyncpa [#allocation4], 1 }
 0x141   :  { %452 = vsyncpa [#allocation4 + $0x1], 1 }

</bundles_post_ra>
